<compile_context>
chip_gen: v7x
topology: tpu7x:2x2x1
jax: 0.10.0
libtpu: 0.0.40
codegen_flags: <defaults>
</compile_context>

<pallas_src>
import jax
import jax.numpy as jnp
from jax import lax
from jax.experimental import pallas as pl
from jax.experimental.pallas import tpu as pltpu

INPUT_DIM = 300
OUTPUT_DIM = 4
BATCH = 8

# Largest batch tile per grid step.  Per-tile VMEM: feats = TILE_B*300*4B
# (~1.2 MiB at 1024) x 2 pipeline buffers + tiny outputs -> far below the
# 32 MiB scoped / 64 MiB (v7x) VMEM limits.  Raise vmem_limit_bytes before
# going much larger on v7x.
MAX_TILE_B = 1024


def _round_up(x: int, m: int) -> int:
    return (x + m - 1) // m * m


def _choose_tile_b(batch: int, max_tile_b: int) -> int:
    b8 = _round_up(batch, 8)
    if b8 <= max_tile_b:
        # Single tile: every block dim equals the (padded) array dim, so the
        # (8,128) divisibility rule is waived.
        return b8
    # Multi-tile: lane-tiled arrays (logits^T, stats, targets) need the tile
    # to be a multiple of 128 for unmasked, lane-dense loads/stores.
    return max(128, (max_tile_b // 128) * 128)


def _nn_kernel(w_ref, feats_ref, tgt_ref, logits_t_ref, stats_ref):
    w = w_ref[...]        # [C, D]  f32, PyTorch Linear layout (lane-dense), VMEM-resident
    x = feats_ref[...]    # [TB, D] f32 batch tile
    tgt = tgt_ref[...]    # [1, TB] i32

    # logits^T = W @ X^T : contract the lane (D) axis of both operands on the
    # MXU.  Output [C, TB] is lane-dense in samples.
    logits_t = lax.dot_general(
        w, x,
        dimension_numbers=(((1,), (1,)), ((), ())),
        preferred_element_type=jnp.float32,
    )                                                      # [C, TB]
    logits_t_ref[...] = logits_t

    C, TB = logits_t.shape

    # ---- log_softmax over classes (sublane axis), numerically stable ----
    m = jnp.max(logits_t, axis=0, keepdims=True)           # [1, TB]
    shifted = logits_t - m
    lse = jnp.log(jnp.sum(jnp.exp(shifted), axis=0, keepdims=True))
    log_probs = shifted - lse                               # [C, TB]

    # ---- one-hot cross-entropy per sample ----
    class_ids = lax.broadcasted_iota(jnp.int32, (C, TB), 0)
    one_hot = (class_ids == tgt).astype(jnp.float32)        # [C, TB]
    loss_per_sample = -jnp.sum(one_hot * log_probs, axis=0, keepdims=True)  # [1, TB]

    # ---- argmax(-1), first-max-index semantics ----
    # NOTE: the exact float equality against `m` is only valid because `m` is
    # the max of these very same f32 logits; do not change the matmul /
    # accumulator dtype without revisiting this.
    preds = jnp.min(jnp.where(logits_t == m, class_ids, C), axis=0, keepdims=True)
    correct = (preds == tgt).astype(jnp.float32)             # [1, TB]

    # Per-sample partials only; batch reductions happen in the wrapper so the
    # grid axis stays parallel (no cross-tile accumulator).
    stats_ref[0:1, :] = loss_per_sample
    stats_ref[1:2, :] = correct


def neural_network_forward(feats, weight, targets, *, max_tile_b: int = MAX_TILE_B):
    """feats: [B, D] f32, weight: [C, D] f32 (PyTorch Linear layout, used as-is,
    no transpose / no host-side padding), targets: [B] int.
    Returns dict(logits [B, C], loss, acc)."""
    B, D = feats.shape
    C = weight.shape[0]

    tile_b = _choose_tile_b(B, max_tile_b)
    Bp = _round_up(B, tile_b)
    if Bp != B:
        # Padded rows are sliced away before the final batch reductions, so
        # they never contribute to loss / acc / logits.
        feats = jnp.pad(feats, ((0, Bp - B), (0, 0)))
        targets = jnp.pad(targets, (0, Bp - B), constant_values=-1)
    tgt_row = targets.astype(jnp.int32).reshape(1, Bp)

    num_tiles = Bp // tile_b

    cost = pl.CostEstimate(
        flops=2 * Bp * D * C,
        transcendentals=Bp * C,
        bytes_accessed=4 * (Bp * D + C * D + Bp + C * Bp + 2 * Bp),
    )

    logits_t, stats = pl.pallas_call(
        _nn_kernel,
        grid=(num_tiles,),
        in_specs=[
            # Constant block index -> weight is DMA'd once and stays resident
            # in VMEM across every batch tile.
            pl.BlockSpec((C, D), lambda i: (0, 0)),
            pl.BlockSpec((tile_b, D), lambda i: (i, 0)),
            pl.BlockSpec((1, tile_b), lambda i: (0, i)),
        ],
        out_specs=(
            pl.BlockSpec((C, tile_b), lambda i: (0, i)),   # logits^T, lane-dense store
            pl.BlockSpec((2, tile_b), lambda i: (0, i)),   # per-sample [loss, correct]
        ),
        out_shape=(
            jax.ShapeDtypeStruct((C, Bp), jnp.float32),
            jax.ShapeDtypeStruct((2, Bp), jnp.float32),
        ),
        compiler_params=pltpu.CompilerParams(
            dimension_semantics=("parallel",),
        ),
        cost_estimate=cost,
    )(weight, feats, tgt_row)

    logits = logits_t[:, :B].T                    # cheap XLA transpose back to [B, C]
    loss_per_sample = stats[0, :B]
    loss = loss_per_sample.mean() if B > 1 else loss_per_sample  # match module semantics
    acc = jnp.sum(stats[1, :B]) / B
    return {"logits": logits, "loss": loss, "acc": acc}


if __name__ == "__main__":
    key = jax.random.PRNGKey(0)
    k_w, k_x, k_t, k_x2, k_t2 = jax.random.split(key, 5)

    # nn.init.normal_(weight, 0, 0.01) -> deterministic synthetic init
    weight = 0.01 * jax.random.normal(k_w, (OUTPUT_DIM, INPUT_DIM), dtype=jnp.float32)

    def ref_forward(f, t):
        lg = f @ weight.T
        lp = jax.nn.log_softmax(lg, axis=-1)
        ls = jnp.mean(-jnp.take_along_axis(lp, t[:, None], axis=-1))
        ac = jnp.mean((jnp.argmax(lg, -1) == t).astype(jnp.float32))
        return lg, ls, ac

    # 1) module-default small shapes (single resident block).
    feats = jax.random.normal(k_x, (BATCH, INPUT_DIM), dtype=jnp.float32)
    targets = jax.random.randint(k_t, (BATCH,), 0, OUTPUT_DIM, dtype=jnp.int32)
    out = neural_network_forward(feats, weight, targets)
    jax.block_until_ready(out)
    r_lg, r_ls, r_ac = ref_forward(feats, targets)
    assert jnp.allclose(out["logits"], r_lg, atol=1e-5)
    assert jnp.allclose(out["loss"], r_ls, atol=1e-5)
    assert jnp.allclose(out["acc"], r_ac, atol=1e-6)

    # 2) multi-tile path: batch grid with VMEM-resident weight, ragged batch
    #    padding, parallel batch axis (v7x dual TensorCore).
    B2 = 300
    feats2 = jax.random.normal(k_x2, (B2, INPUT_DIM), dtype=jnp.float32)
    targets2 = jax.random.randint(k_t2, (B2,), 0, OUTPUT_DIM, dtype=jnp.int32)
    out2 = neural_network_forward(feats2, weight, targets2, max_tile_b=128)
    jax.block_until_ready(out2)
    r_lg2, r_ls2, r_ac2 = ref_forward(feats2, targets2)
    assert jnp.allclose(out2["logits"], r_lg2, atol=1e-5)
    assert jnp.allclose(out2["loss"], r_ls2, atol=1e-5)
    assert jnp.allclose(out2["acc"], r_ac2, atol=1e-6)

    print("KERNEL_OK")
</pallas_src>

<mosaic_0001>
module attributes {stable_mosaic.version = 11 : i64} {
  func.func @_nn_kernel(%arg0: i32, %arg1: memref<4x300xf32, #tpu.memory_space<vmem>>, %arg2: memref<8x300xf32, #tpu.memory_space<vmem>>, %arg3: memref<1x8xi32, #tpu.memory_space<vmem>>, %arg4: memref<4x8xf32, #tpu.memory_space<vmem>>, %arg5: memref<2x8xf32, #tpu.memory_space<vmem>>) attributes {dimension_semantics = [#tpu.dimension_semantics<parallel>], iteration_bounds = array<i64: 1>, scalar_prefetch = 0 : i64, scratch_operands = 0 : i64, tpu.core_type = #tpu.core_type<tc>, window_params = [{pipeline_mode = #tpu.pipeline_mode<synchronous>, transform_indices = @transform_0, window_bounds = array<i64: 4, 300>}, {transform_indices = @transform_1, window_bounds = array<i64: 8, 300>}, {transform_indices = @transform_2, window_bounds = array<i64: 1, 8>}, {transform_indices = @transform_3, window_bounds = array<i64: 4, 8>}, {transform_indices = @transform_4, window_bounds = array<i64: 2, 8>}]} {
    %c0 = arith.constant 0 : index
    %c0_0 = arith.constant 0 : index
    %0 = vector.load %arg1[%c0, %c0_0] : memref<4x300xf32, #tpu.memory_space<vmem>>, vector<4x300xf32>
    %c0_1 = arith.constant 0 : index
    %c0_2 = arith.constant 0 : index
    %1 = vector.load %arg2[%c0_1, %c0_2] : memref<8x300xf32, #tpu.memory_space<vmem>>, vector<8x300xf32>
    %c0_3 = arith.constant 0 : index
    %c0_4 = arith.constant 0 : index
    %2 = vector.load %arg3[%c0_3, %c0_4] : memref<1x8xi32, #tpu.memory_space<vmem>>, vector<1x8xi32>
    %cst = arith.constant dense<0.000000e+00> : vector<4x8xf32>
    %3 = tpu.matmul %0, %1, %cst {dimension_numbers = #tpu.dot_dimension_numbers<[1], [1], [0], [0], [0, 0, 1, 0], [], []>} : vector<4x300xf32>, vector<8x300xf32>, vector<4x8xf32> -> vector<4x8xf32>
    %c0_5 = arith.constant 0 : index
    %c0_6 = arith.constant 0 : index
    %4 = vector.load %arg4[%c0_5, %c0_6] : memref<4x8xf32, #tpu.memory_space<vmem>>, vector<4x8xf32>
    tpu.vector_store %arg4[%c0_5, %c0_6], %3 {strides = array<i32>} : memref<4x8xf32, #tpu.memory_space<vmem>>, vector<4x8xf32>,
    %cst_7 = arith.constant dense<0xFF800000> : vector<8xf32>
    %5 = vector.multi_reduction <maximumf>, %3, %cst_7 [0] : vector<4x8xf32> to vector<8xf32>
    %6 = vector.shape_cast %5 : vector<8xf32> to vector<1x8xf32>
    %7 = vector.broadcast %6 : vector<1x8xf32> to vector<4x8xf32>
    %8 = arith.subf %3, %7 : vector<4x8xf32>
    %9 = math.exp %8 : vector<4x8xf32>
    %cst_8 = arith.constant dense<0.000000e+00> : vector<8xf32>
    %10 = vector.multi_reduction <add>, %9, %cst_8 [0] : vector<4x8xf32> to vector<8xf32>
    %11 = vector.shape_cast %10 : vector<8xf32> to vector<1x8xf32>
    %12 = math.log %11 : vector<1x8xf32>
    %13 = vector.broadcast %12 : vector<1x8xf32> to vector<4x8xf32>
    %14 = arith.subf %8, %13 : vector<4x8xf32>
    %15 = tpu.iota {dimensions = array<i32: 0>} : vector<4x8xi32>
    %16 = vector.broadcast %2 : vector<1x8xi32> to vector<4x8xi32>
    %17 = arith.cmpi eq, %15, %16 : vector<4x8xi32>
    %18 = arith.extui %17 : vector<4x8xi1> to vector<4x8xi32>
    %19 = arith.sitofp %18 : vector<4x8xi32> to vector<4x8xf32>
    %20 = arith.mulf %19, %14 : vector<4x8xf32>
    %cst_9 = arith.constant dense<0.000000e+00> : vector<8xf32>
    %21 = vector.multi_reduction <add>, %20, %cst_9 [0] : vector<4x8xf32> to vector<8xf32>
    %22 = vector.shape_cast %21 : vector<8xf32> to vector<1x8xf32>
    %cst_10 = arith.constant 0.000000e+00 : f32
    %23 = vector.broadcast %cst_10 : f32 to vector<1x8xf32>
    %24 = arith.subf %23, %22 : vector<1x8xf32>
    %25 = vector.broadcast %6 : vector<1x8xf32> to vector<4x8xf32>
    %26 = arith.cmpf oeq, %3, %25 : vector<4x8xf32>
    %c4_i32 = arith.constant 4 : i32
    %27 = vector.broadcast %c4_i32 : i32 to vector<4x8xi32>
    %28 = arith.select %26, %15, %27 : vector<4x8xi1>, vector<4x8xi32>
    %cst_11 = arith.constant dense<2147483647> : vector<8xi32>
    %29 = vector.multi_reduction <minsi>, %28, %cst_11 [0] : vector<4x8xi32> to vector<8xi32>
    %30 = vector.shape_cast %29 : vector<8xi32> to vector<1x8xi32>
    %31 = arith.cmpi eq, %30, %2 : vector<1x8xi32>
    %32 = arith.extui %31 : vector<1x8xi1> to vector<1x8xi32>
    %33 = arith.sitofp %32 : vector<1x8xi32> to vector<1x8xf32>
    %c0_12 = arith.constant 0 : index
    %c0_13 = arith.constant 0 : index
    %34 = vector.load %arg5[%c0_12, %c0_13] : memref<2x8xf32, #tpu.memory_space<vmem>>, vector<1x8xf32>
    tpu.vector_store %arg5[%c0_12, %c0_13], %24 {strides = array<i32>} : memref<2x8xf32, #tpu.memory_space<vmem>>, vector<1x8xf32>,
    %c1 = arith.constant 1 : index
    %c0_14 = arith.constant 0 : index
    %35 = vector.load %arg5[%c1, %c0_14] : memref<2x8xf32, #tpu.memory_space<vmem>>, vector<1x8xf32>
    tpu.vector_store %arg5[%c1, %c0_14], %33 {strides = array<i32>} : memref<2x8xf32, #tpu.memory_space<vmem>>, vector<1x8xf32>,
    return
  }
  func.func @transform_0(%arg0: i32) -> (i32, i32) {
    %c0_i32 = arith.constant 0 : i32
    %c0_i32_0 = arith.constant 0 : i32
    %c0_i32_1 = arith.constant 0 : i32
    return %c0_i32, %c0_i32_0 : i32, i32
  }
  func.func @transform_1(%arg0: i32) -> (i32, i32) {
    %c0_i32 = arith.constant 0 : i32
    %c0_i32_0 = arith.constant 0 : i32
    return %arg0, %c0_i32 : i32, i32
  }
  func.func @transform_2(%arg0: i32) -> (i32, i32) {
    %c0_i32 = arith.constant 0 : i32
    %c0_i32_0 = arith.constant 0 : i32
    return %c0_i32, %arg0 : i32, i32
  }
  func.func @transform_3(%arg0: i32) -> (i32, i32) {
    %c0_i32 = arith.constant 0 : i32
    %c0_i32_0 = arith.constant 0 : i32
    return %c0_i32, %arg0 : i32, i32
  }
  func.func @transform_4(%arg0: i32) -> (i32, i32) {
    %c0_i32 = arith.constant 0 : i32
    %c0_i32_0 = arith.constant 0 : i32
    return %c0_i32, %arg0 : i32, i32
  }
}

</mosaic_0001>

<bundles_post_ra>
// kernel: tpu_custom_call.1
= control target key start
LH: loop header
LB: loop body
LE: loop exit
PB: predicated region body
PF: predicated region fallthrough
CT: control target
= control target key end

     0   :  { %10 = vsyncpa [#allocation3], 0  ;;  %s498_s0 = inlined_call_operand.hbm [shape: f32[4,300], index: 0, kind: input, shape index: {}]   ;;  %s499_s1 = inlined_call_operand.hbm [shape: f32[8,300], index: 1, kind: input, shape index: {}]   ;;  %s500_s2 = inlined_call_operand.vmem [shape: s32[1,8], index: 2, kind: input, shape index: {}]   ;;  %s501_s3 = inlined_call_operand.hbm [shape: f32[4,8], index: 3, kind: output, shape index: {0}]   ;;  %s502_s4 = inlined_call_operand.hbm [shape: f32[2,8], index: 4, kind: output, shape index: {1}]  }
   0x1   :  { %11 = vsyncpa [#allocation6], 0 }
   0x2   :  { %12 = vsyncpa [#allocation4], 0 }
   0x3   :  { %13 = vsyncpa [#allocation9], 0  ;;  %s405_s15 = smov [#allocation2]   ;;  %s406_s17 = smov [#allocation5]  }
   0x4   :  { %s20_s16 = sshll.u32 %s405_s15, 4  ;;  %s30_s18 = sshll.u32 %s406_s17, 4  ;;  %s21_s16 = int_to_ptr.vmem [resolvable:$true] %s20_s16  ;;  %s31_s18 = int_to_ptr.vmem [resolvable:$true] %s30_s18 }
   0x5   :  { %s309_s21 = scalar_lea.hbm %s498_s0, 192 }
   0x6   :  { %p310_p0 = scmp.ne.s32.totalorder %s498_s0, %s309_s21  ;;  %p313_p1 = scmp.lt.u32.totalorder %s309_s21, %s498_s0 }
   0x8   :  { %p315_p2 = pnand %p313_p1, %p310_p0 }
   0xa   :  { %318 = shalt.err (!%p315_p2)
}
   0xb   :  { %s319_s26 = scalar_lea.vmem %s21_s16, 192  ;;  %p324_p4 = scmp.lt.s32.totalorder %s21_s16, %s21_s16 }
   0xc   :  { %p320_p3 = scmp.ne.s32.totalorder %s21_s16, %s319_s26  ;;  %p325_p5 = scmp.lt.s32.totalorder %s319_s26, %s319_s26 }
   0xe   :  { %p326_p6 = por %p325_p5, %p324_p4 }
  0x10   :  { %p327_p7 = pnand %p326_p6, %p320_p3 }
  0x12   :  { %330 = shalt.err (!%p327_p7)
}
  0x13   :  { %23 = dma.hbm_to_vmem [thread:$0]  %s498_s0, 192, %s21_s16, [#allocation3]  }
  0x14   :  { %s331_s5 = scalar_lea.hbm %s499_s1, 384 }
  0x15   :  { %p332_p8 = scmp.ne.s32.totalorder %s499_s1, %s331_s5  ;;  %p335_p9 = scmp.lt.u32.totalorder %s331_s5, %s499_s1 }
  0x17   :  { %p337_p10 = pnand %p335_p9, %p332_p8 }
  0x19   :  { %340 = shalt.err (!%p337_p10)
}
  0x1a   :  { %s341_s10 = scalar_lea.vmem %s31_s18, 384  ;;  %p346_p12 = scmp.lt.s32.totalorder %s31_s18, %s31_s18 }
  0x1b   :  { %p342_p11 = scmp.ne.s32.totalorder %s31_s18, %s341_s10  ;;  %p347_p13 = scmp.lt.s32.totalorder %s341_s10, %s341_s10 }
  0x1d   :  { %p348_p0 = por %p347_p13, %p346_p12 }
  0x1f   :  { %p349_p1 = pnand %p348_p0, %p342_p11 }
  0x21   :  { %352 = shalt.err (!%p349_p1)
}
  0x22   :  { %33 = dma.hbm_to_vmem [thread:$0]  %s499_s1, 384, %s31_s18, [#allocation6]  }
  0x23   :  { %397 = dma.done.wait [#allocation3], 192  }
  0x24   :  { %398 = vsyncadd [#allocation3], 4294967104 }
  0x25   :  { %399 = dma.done.wait [#allocation6], 384  }
  0x26   :  { %400 = vsyncadd [#allocation6], 4294966912  ;;  %v407_v0 = vmov 0.0   ;;  %vm408_vm0 = vmmov 0   ;;  %vm52_vm1 = vcmask 359424   ;;  %v45_v1 = vld [vmem:[#allocation5 + $0x8] sm:$0xff] }
  0x27   :  { %292 = vmatprep.subr.mxu0 %v407_v0  ;;  %294 = vmatprep.mubr.msk.f32.mxu0 %vm408_vm0, %v407_v0  ;;  %v46_v2 = vld [vmem:[#allocation5 + $0x10] sm:$0xff]  ;;  %v44_v3 = vld [vmem:[#allocation5] sm:$0xff]  ;;  %v43_v5 = vld [vmem:[#allocation2 + $0x8] sm:$0xf]  ;;  %s409_s1 = smov [#allocation7]   ;;  %vm198_vm2 = vcmask 60416  }
  0x28   :  { %58 = vmatprep.subr.mxu1 %v45_v1  ;;  %293 = vmatpush3.xpose.msk.msra.mxu0 %vm52_vm1, %v46_v2  ;;  %v42_v4 = vld [vmem:[#allocation2] sm:$0xff]  ;;  %s262_s12 = sshll.u32 %s409_s1, 4  ;;  %s263_s12 = int_to_ptr.vmem [resolvable:$true] %s262_s12 }
  0x29   :  { %59 = vmatpush1.xpose.msra.mxu1 %v44_v3  ;;  %v50_v6 = vcombine.high %v42_v4, %v42_v4  ;;  %s353_s13 = scalar_lea.vmem %s263_s12, 64  ;;  %p358_p3 = scmp.lt.s32.totalorder %s263_s12, %s263_s12 }
  0x2a   :  { %p354_p2 = scmp.ne.s32.totalorder %s263_s12, %s353_s13  ;;  %p359_p4 = scmp.lt.s32.totalorder %s353_s13, %s353_s13 }
  0x2b   :  { %122 = vmatprep.mubr.f32.mxu1 %v50_v6  ;;  %295 = vmatmul.mubr.msk.f32.vlgmr.msra.gmra.mrb[0].mxu0 %vm52_vm1, %v43_v5 }
  0x2c   :  { %123 = vmatmul.mubr.f32.vlgmr.msra.gmra.mrb[0].mxu1 %v42_v4  ;;  %p360_p5 = por %p359_p4, %p358_p3 }
  0x2e   :  { %p361_p6 = pnand %p360_p5, %p354_p2 }
  0xfe   :  { %v194_v7 = vpop.f32.mrb[0].mxu0 }
  0xff   :  { %v124_v8 = vpop.f32.mrb[0].mxu1  ;;  %v296_v9 = vpop.f32.mrb[1].mxu0 }
 0x100   :  { %v195_v10 = vadd.f32 %v194_v7, %v124_v8  ;;  %v126_v11 = vpop.f32.mrb[1].mxu1 }
 0x102   :  { %199 = vst.msk [vmem:[#allocation7] sm:$0xf] %vm198_vm2, %v195_v10  ;;  %v200_v12 = vsel %vm198_vm2, %v195_v10, -inf }
 0x103   :  { %v201_v13 = vrot.slane %v200_v12, 4 }
 0x104   :  { %364 = shalt.err (!%p361_p6)
}
 0x105   :  { %s365_s16 = scalar_lea.hbm %s501_s3, 64 }
 0x106   :  { %p366_p7 = scmp.ne.s32.totalorder %s501_s3, %s365_s16  ;;  %p369_p8 = scmp.lt.u32.totalorder %s365_s16, %s501_s3 }
 0x108   :  { %p371_p9 = pnand %p369_p8, %p366_p7 }
 0x10a   :  { %374 = shalt.err (!%p371_p9)
}
 0x10b   :  { %265 = dma.vmem_to_hbm [thread:$0]  %s263_s12, 64, %s501_s3, [#allocation4]   ;;  %v202_v14 = vmax.f32 %v200_v12, %v201_v13  ;;  %v220_v16 = vlaneseq  ;;  %v47_v30 = vld [vmem:[%s500_s2] sm:$0x1]  ;;  %vm253_vm7 = vcmask 57344  }
 0x10c   :  { %s410_s2 = smov [#allocation8]  }
 0x10d   :  { %v203_v15 = vrot.slane %v202_v14, 2  ;;  %v221_v19 = vshrl.u32 %v220_v16, 7  ;;  %s272_s24 = sshll.u32 %s410_s2, 4  ;;  %s273_s24 = int_to_ptr.vmem [resolvable:$true] %s272_s24 }
 0x10e   :  { %s375_s25 = scalar_lea.vmem %s273_s24, 32  ;;  %p380_p11 = scmp.lt.s32.totalorder %s273_s24, %s273_s24 }
 0x10f   :  { %v204_v17 = vmax.f32 %v202_v14, %v203_v15  ;;  %v224_v41 = vsub.s32 0, %v221_v19  ;;  %p376_p10 = scmp.ne.s32.totalorder %s273_s24, %s375_s25  ;;  %p381_p12 = scmp.lt.s32.totalorder %s375_s25, %s375_s25 }
 0x111   :  { %v205_v18 = vrot.slane %v204_v17, 1  ;;  %v225_v42 = vrot.slane %v47_v30, %v224_v41  ;;  %p382_p13 = por %p381_p12, %p380_p11 }
 0x113   :  { %v206_v20 = vmax.f32 %v204_v17, %v205_v18  ;;  %vm226_vm9 = vcmp.eq.s32.totalorder %v221_v19, %v225_v42  ;;  %p383_p0 = pnand %p382_p13, %p376_p10 }
 0x114   :  { %v288_v45 = vsel %vm226_vm9, 1.0, %v407_v0 }
 0x115   :  { %v207_v21 = vsub.f32 %v195_v10, %v206_v20  ;;  %vm238_vm3 = vcmp.eq.f32.partialorder %v195_v10, %v206_v20 }
 0x116   :  { %v239_v22 = vsel %vm238_vm3, %v221_v19, 4 }
 0x117   :  { %v208_v23 = vmul.f32 1.442695, %v207_v21  ;;  %v240_v24 = vsel %vm198_vm2, %v239_v22, 2147483647 }
 0x118   :  { %v241_v25 = vrot.slane %v240_v24, 4 }
 0x119   :  { %305 = vpow2.f32 %v208_v23 }
 0x11a   :  { %vm242_vm4 = vcmp.lt.s32.totalorder %v240_v24, %v241_v25 }
 0x11b   :  { %v243_v26 = vsel %vm242_vm4, %v240_v24, %v241_v25 }
 0x11c   :  { %v244_v27 = vrot.slane %v243_v26, 2 }
 0x11e   :  { %vm245_vm5 = vcmp.lt.s32.totalorder %v243_v26, %v244_v27 }
 0x11f   :  { %v246_v28 = vsel %vm245_vm5, %v243_v26, %v244_v27 }
 0x120   :  { %v247_v29 = vrot.slane %v246_v28, 1 }
 0x122   :  { %vm248_vm6 = vcmp.lt.s32.totalorder %v246_v28, %v247_v29 }
 0x123   :  { %v306_v31 = vpop.eup %305  ;;  %v249_v32 = vsel %vm248_vm6, %v246_v28, %v247_v29 }
 0x124   :  { %v210_v33 = vsel %vm198_vm2, %v306_v31, 0.0  ;;  %vm250_vm8 = vcmp.eq.s32.totalorder %v249_v32, %v47_v30 }
 0x125   :  { %v211_v34 = vrot.slane %v210_v33, 4  ;;  %v289_v35 = vsel %vm250_vm8, 1.0, %v407_v0 }
 0x126   :  { %255 = vst.msk [vmem:[#allocation8 + $0x1] sm:$0x1] %vm253_vm7, %v289_v35 }
 0x127   :  { %v212_v36 = vadd.f32 %v211_v34, %v210_v33 }
 0x129   :  { %v213_v37 = vrot.slane %v212_v36, 2 }
 0x12b   :  { %v214_v38 = vadd.f32 %v213_v37, %v212_v36 }
 0x12d   :  { %v215_v39 = vrot.slane %v214_v38, 1 }
 0x12f   :  { %v216_v40 = vadd.f32 %v215_v39, %v214_v38 }
 0x131   :  { %307 = vlog2.f32 %v216_v40 }
 0x13b   :  { %v308_v43 = vpop.eup %307 }
 0x13c   :  { %v218_v44 = vmul.f32 0.6931472, %v308_v43 }
 0x13e   :  { %v219_v46 = vsub.f32 %v207_v21, %v218_v44 }
 0x140   :  { %v229_v47 = vmul.f32 %v288_v45, %v219_v46 }
 0x142   :  { %v230_v48 = vsel %vm198_vm2, %v229_v47, 0.0 }
 0x143   :  { %v231_v49 = vrot.slane %v230_v48, 4 }
 0x145   :  { %v232_v50 = vadd.f32 %v231_v49, %v230_v48 }
 0x147   :  { %v233_v51 = vrot.slane %v232_v50, 2 }
 0x149   :  { %v234_v52 = vadd.f32 %v233_v51, %v232_v50 }
 0x14b   :  { %v235_v53 = vrot.slane %v234_v52, 1 }
 0x14d   :  { %v236_v54 = vadd.f32 %v235_v53, %v234_v52 }
 0x14f   :  { %v237_v55 = vsub.f32 0.0, %v236_v54 }
 0x151   :  { %254 = vst.msk [vmem:[#allocation8] sm:$0x1] %vm253_vm7, %v237_v55 }
 0x152   :  { %386 = shalt.err (!%p383_p0)
}
 0x153   :  { %s387_s28 = scalar_lea.hbm %s502_s4, 32 }
 0x154   :  { %p388_p1 = scmp.ne.s32.totalorder %s502_s4, %s387_s28  ;;  %p391_p2 = scmp.lt.u32.totalorder %s387_s28, %s502_s4 }
 0x156   :  { %p393_p3 = pnand %p391_p2, %p388_p1 }
 0x158   :  { %396 = shalt.err (!%p393_p3)
}
 0x159   :  { %275 = dma.vmem_to_hbm [thread:$0]  %s273_s24, 32, %s502_s4, [#allocation9]  }
 0x15a   :  { %401 = dma.done.wait [#allocation4], 64  }
 0x15b   :  { %402 = vsyncadd [#allocation4], 4294967232 }
 0x15c   :  { %403 = dma.done.wait [#allocation9], 32  }
 0x15d   :  { %404 = vsyncadd [#allocation9], 4294967264 }
 0x15e   :  { %282 = vsyncpa [#allocation3], 1 }
 0x15f   :  { %283 = vsyncpa [#allocation6], 1 }
 0x160   :  { %284 = vsyncpa [#allocation4], 1 }
 0x161   :  { %285 = vsyncpa [#allocation9], 1 }

</bundles_post_ra>
